<compile_context>
chip_gen: v5e
topology: v5e:2x2
jax: 0.10.0
libtpu: 0.0.40
codegen_flags: <defaults>
</compile_context>

<pallas_src>
import jax
import jax.numpy as jnp
from jax.experimental import pallas as pl
from jax.experimental.pallas import tpu as pltpu

_LANES = 128
_SAMPLES_PER_ROW = _LANES // 2          # 64 samples per 128-lane row
_MAX_TILE_ROWS = 2048                   # (2048, 128) f32 block = 1 MiB


def _mlp_kernel(coef_ref, x_ref, o_ref):
    """out[i] = x[i]*a[i] + x[i+1]*b[i] + x[i-1]*c[i] + d[i]  per 128-lane row.

    coef rows (built on host, broadcast over sublanes):
      row 0 (a): even lanes Wf[0,0], odd lanes Wf[1,1]   (own-lane coefficient)
      row 1 (b): even lanes Wf[1,0], odd lanes 0         (right-neighbour coefficient)
      row 2 (c): even lanes 0,       odd lanes Wf[0,1]   (left-neighbour coefficient)
      row 3 (d): even lanes bf[0],   odd lanes bf[1]     (fused bias)
    Wrap-around lanes of the rolls are always multiplied by a zero coefficient.
    """
    x = x_ref[...]                                      # (TILE_R, 128) f32
    # pltpu.roll follows jnp.roll semantics: result[i] = x[(i - shift) % 128]
    nxt = pltpu.roll(x, shift=_LANES - 1, axis=1)       # lane i <- x[i + 1]
    prv = pltpu.roll(x, shift=1, axis=1)                # lane i <- x[i - 1]
    o_ref[...] = (x * coef_ref[0:1, :]
                  + nxt * coef_ref[1:2, :]
                  + prv * coef_ref[2:3, :]
                  + coef_ref[3:4, :])


def _round_up(n, m):
    return ((n + m - 1) // m) * m


def mlp_forward(x, w1, b1, w2, b2):
    """Forward pass of MLP: X.view(B, -1) -> Linear(2,2) -> Linear(2,2)."""
    batch = x.shape[0]
    x2d = x.reshape(batch, -1)
    assert x2d.shape[1] == 2, "MLP expects 2 input features after flatten"
    out_dtype = x2d.dtype
    x2d = x2d.astype(jnp.float32)

    # ---- host-side algebraic fusion of the two linear layers ----------------
    w1f = w1.astype(jnp.float32)
    w2f = w2.astype(jnp.float32)
    wf = w1f.T @ w2f.T                                         # (in=2, out=2)
    bf = b1.astype(jnp.float32) @ w2f.T + b2.astype(jnp.float32)   # (2,)

    # ---- host-side coefficient table for the lane-interleaved layout --------
    lane = jnp.arange(_LANES, dtype=jnp.int32)
    even = (lane % 2) == 0
    zeros = jnp.zeros((_LANES,), jnp.float32)
    coef = jnp.stack([
        jnp.where(even, wf[0, 0], wf[1, 1]),      # a: own-lane coefficient
        jnp.where(even, wf[1, 0], 0.0),           # b: right-neighbour coefficient
        jnp.where(even, 0.0, wf[0, 1]),           # c: left-neighbour coefficient
        jnp.where(even, bf[0], bf[1]),            # d: fused bias
        zeros, zeros, zeros, zeros,               # pad to 8 sublanes
    ]).astype(jnp.float32)                        # (8, 128)

    # ---- lane-dense slab layout + batch tiling -------------------------------
    rows = pl.cdiv(batch, _SAMPLES_PER_ROW)
    tile_rows = min(_MAX_TILE_ROWS, _round_up(rows, 8))
    rows_pad = _round_up(rows, tile_rows)
    batch_pad = rows_pad * _SAMPLES_PER_ROW

    if batch_pad != batch:
        x2d = jnp.pad(x2d, ((0, batch_pad - batch), (0, 0)))
    # Zero-copy view: lanes interleave the 2 features, 64 samples per row.
    x_slab = x2d.reshape(rows_pad, _LANES)

    grid = (rows_pad // tile_rows,)
    out_slab = pl.pallas_call(
        _mlp_kernel,
        out_shape=jax.ShapeDtypeStruct((rows_pad, _LANES), jnp.float32),
        grid=grid,
        in_specs=[
            pl.BlockSpec((8, _LANES), lambda i: (0, 0)),            # coefficients
            pl.BlockSpec((tile_rows, _LANES), lambda i: (i, 0)),    # input slab
        ],
        out_specs=pl.BlockSpec((tile_rows, _LANES), lambda i: (i, 0)),
        compiler_params=pltpu.CompilerParams(
            dimension_semantics=("parallel",),
            vmem_limit_bytes=32 * 1024 * 1024,
        ),
    )(coef, x_slab)

    out = out_slab.reshape(batch_pad, 2)[:batch]
    return out.astype(out_dtype)


def init_params(key):
    """Deterministic init mimicking nn.Linear's U(-1/sqrt(in), 1/sqrt(in))."""
    k1, k2, k3, k4 = jax.random.split(key, 4)
    bound = 1.0 / jnp.sqrt(2.0)  # in_features = 2
    w1 = jax.random.uniform(k1, (2, 2), jnp.float32, -bound, bound)
    b1 = jax.random.uniform(k2, (2,), jnp.float32, -bound, bound)
    w2 = jax.random.uniform(k3, (2, 2), jnp.float32, -bound, bound)
    b2 = jax.random.uniform(k4, (2,), jnp.float32, -bound, bound)
    return w1, b1, w2, b2


if __name__ == "__main__":
    key = jax.random.PRNGKey(0)
    k_params, k_x1, k_x2 = jax.random.split(key, 3)
    w1, b1, w2, b2 = init_params(k_params)

    def reference(xx):
        x2 = xx.reshape(xx.shape[0], -1)
        return (x2 @ w1.T + b1) @ w2.T + b2

    # Small batch (8 samples, 2 features) matching the module's Linear(2, 2).
    x_small = jax.random.normal(k_x1, (8, 2), jnp.float32)
    out_small = jax.block_until_ready(mlp_forward(x_small, w1, b1, w2, b2))
    assert out_small.shape == (8, 2)
    assert jnp.allclose(out_small, reference(x_small), atol=1e-5, rtol=1e-5)

    # Non-multiple-of-64 batch to exercise the padding + lane-dense tiling path.
    x_big = jax.random.normal(k_x2, (200, 2), jnp.float32)
    out_big = jax.block_until_ready(mlp_forward(x_big, w1, b1, w2, b2))
    assert out_big.shape == (200, 2)
    assert jnp.allclose(out_big, reference(x_big), atol=1e-5, rtol=1e-5)

    print("KERNEL_OK")
</pallas_src>

<mosaic_0001>
module attributes {stable_mosaic.version = 11 : i64} {
  func.func @_mlp_kernel(%arg0: i32, %arg1: memref<8x128xf32, #tpu.memory_space<vmem>>, %arg2: memref<8x128xf32, #tpu.memory_space<vmem>>, %arg3: memref<8x128xf32, #tpu.memory_space<vmem>>) attributes {dimension_semantics = [#tpu.dimension_semantics<parallel>], iteration_bounds = array<i64: 1>, scalar_prefetch = 0 : i64, scratch_operands = 0 : i64, tpu.core_type = #tpu.core_type<tc>, window_params = [{pipeline_mode = #tpu.pipeline_mode<synchronous>, transform_indices = @transform_0, window_bounds = array<i64: 8, 128>}, {transform_indices = @transform_1, window_bounds = array<i64: 8, 128>}, {transform_indices = @transform_2, window_bounds = array<i64: 8, 128>}]} {
    %c0 = arith.constant 0 : index
    %c0_0 = arith.constant 0 : index
    %0 = vector.load %arg2[%c0, %c0_0] : memref<8x128xf32, #tpu.memory_space<vmem>>, vector<8x128xf32>
    %c127_i32 = arith.constant 127 : i32
    %1 = tpu.dynamic_rotate %0 by %c127_i32 dim 1 : vector<8x128xf32>, i32 -> vector<8x128xf32>
    %c1_i32 = arith.constant 1 : i32
    %2 = tpu.dynamic_rotate %0 by %c1_i32 dim 1 : vector<8x128xf32>, i32 -> vector<8x128xf32>
    %c0_1 = arith.constant 0 : index
    %c0_2 = arith.constant 0 : index
    %3 = vector.load %arg1[%c0_1, %c0_2] : memref<8x128xf32, #tpu.memory_space<vmem>>, vector<1x128xf32>
    %4 = vector.broadcast %3 : vector<1x128xf32> to vector<8x128xf32>
    %5 = arith.mulf %0, %4 : vector<8x128xf32>
    %c1 = arith.constant 1 : index
    %c0_3 = arith.constant 0 : index
    %6 = vector.load %arg1[%c1, %c0_3] : memref<8x128xf32, #tpu.memory_space<vmem>>, vector<1x128xf32>
    %7 = vector.broadcast %6 : vector<1x128xf32> to vector<8x128xf32>
    %8 = arith.mulf %1, %7 : vector<8x128xf32>
    %9 = arith.addf %5, %8 : vector<8x128xf32>
    %c2 = arith.constant 2 : index
    %c0_4 = arith.constant 0 : index
    %10 = vector.load %arg1[%c2, %c0_4] : memref<8x128xf32, #tpu.memory_space<vmem>>, vector<1x128xf32>
    %11 = vector.broadcast %10 : vector<1x128xf32> to vector<8x128xf32>
    %12 = arith.mulf %2, %11 : vector<8x128xf32>
    %13 = arith.addf %9, %12 : vector<8x128xf32>
    %c3 = arith.constant 3 : index
    %c0_5 = arith.constant 0 : index
    %14 = vector.load %arg1[%c3, %c0_5] : memref<8x128xf32, #tpu.memory_space<vmem>>, vector<1x128xf32>
    %15 = vector.broadcast %14 : vector<1x128xf32> to vector<8x128xf32>
    %16 = arith.addf %13, %15 : vector<8x128xf32>
    %c0_6 = arith.constant 0 : index
    %c0_7 = arith.constant 0 : index
    %17 = vector.load %arg3[%c0_6, %c0_7] : memref<8x128xf32, #tpu.memory_space<vmem>>, vector<8x128xf32>
    tpu.vector_store %arg3[%c0_6, %c0_7], %16 {strides = array<i32>} : memref<8x128xf32, #tpu.memory_space<vmem>>, vector<8x128xf32>,
    return
  }
  func.func @transform_0(%arg0: i32) -> (i32, i32) {
    %c0_i32 = arith.constant 0 : i32
    %c0_i32_0 = arith.constant 0 : i32
    %c0_i32_1 = arith.constant 0 : i32
    return %c0_i32, %c0_i32_0 : i32, i32
  }
  func.func @transform_1(%arg0: i32) -> (i32, i32) {
    %c0_i32 = arith.constant 0 : i32
    %c0_i32_0 = arith.constant 0 : i32
    return %arg0, %c0_i32 : i32, i32
  }
  func.func @transform_2(%arg0: i32) -> (i32, i32) {
    %c0_i32 = arith.constant 0 : i32
    %c0_i32_0 = arith.constant 0 : i32
    return %arg0, %c0_i32 : i32, i32
  }
}

</mosaic_0001>

<bundles_post_ra>
// kernel: tpu_custom_call.1
= control target key start
LH: loop header
LB: loop body
LE: loop exit
PB: predicated region body
PF: predicated region fallthrough
CT: control target
= control target key end

     0   :  { %7 = vsyncpa [#allocation3], 0  ;;  %s194_s0 = inlined_call_operand.hbm [shape: f32[8,128], index: 0, kind: input, shape index: {}]   ;;  %s195_s1 = inlined_call_operand.hbm [shape: f32[8,128], index: 1, kind: input, shape index: {}]   ;;  %s196_s2 = inlined_call_operand.hbm [shape: f32[8,128], index: 2, kind: output, shape index: {}]  }
   0x1   :  { %8 = vsyncpa [#allocation6], 0 }
   0x2   :  { %9 = vsyncpa [#allocation4], 0  ;;  %s15_s11 = sshll.u32 %s194_s0, 4  ;;  %s165_s12 = smov [#allocation2]   ;;  %s16_s11 = int_to_ptr.hbm [resolvable:$true] %s15_s11 }
   0x3   :  { %s17_s13 = sshll.u32 %s165_s12, 4  ;;  %s26_s16 = sshll.u32 %s195_s1, 4  ;;  %s18_s13 = int_to_ptr.vmem [resolvable:$true] %s17_s13  ;;  %s27_s16 = int_to_ptr.hbm [resolvable:$true] %s26_s16 }
   0x4   :  { %20 = dma.hbm_to_vmem [thread:$0]  %s16_s11, 128, %s18_s13, [#allocation3]  }
   0x5   :  { %s166_s17 = smov [#allocation5]  }
   0x6   :  { %s28_s18 = sshll.u32 %s166_s17, 4  ;;  %s29_s18 = int_to_ptr.vmem [resolvable:$true] %s28_s18 }
   0x7   :  { %31 = dma.hbm_to_vmem [thread:$0]  %s27_s16, 128, %s29_s18, [#allocation6]  }
   0x8   :  { %159 = dma.done.wait [#allocation3], 128  }
   0x9   :  { %160 = vsyncadd [#allocation3], 4294967168 }
   0xa   :  { %161 = dma.done.wait [#allocation6], 128  }
   0xb   :  { %162 = vsyncadd [#allocation6], 4294967168  ;;  %v40_v0 = vld [vmem:[#allocation5] sm:$0xff]  ;;  %s167_s0 = smov 127   ;;  %s168_s19 = smov 1  }
   0xc   :  { %41 = vrot.lane.b32.xlu0 %v40_v0, %s167_s0  ;;  %v83_v2 = vld [vmem:[#allocation2] ss:$0 sm:$0xff]  ;;  %v84_v3 = vld [vmem:[#allocation2 + $0x1] ss:$0 sm:$0xff]  ;;  %v85_v6 = vld [vmem:[#allocation2 + $0x2] ss:$0 sm:$0xff] }
   0xd   :  { %v47_v4 = vmul.f32 %v83_v2, %v40_v0  ;;  %v86_v9 = vld [vmem:[#allocation2 + $0x3] ss:$0 sm:$0xff]  ;;  %s169_s1 = smov [#allocation7]   ;;  %s67_s23 = sshll.u32 %s196_s2, 4  ;;  %s68_s23 = int_to_ptr.hbm [resolvable:$true] %s67_s23 }
   0xe   :  { %s65_s20 = sshll.u32 %s169_s1, 4  ;;  %s66_s20 = int_to_ptr.vmem [resolvable:$true] %s65_s20 }
  0x14   :  { %43 = vrot.lane.b32.xlu0 %v40_v0, %s168_s19 }
  0x7e   :  { %v42_v1 = vpop.permute.xlu0 %41 }
  0x7f   :  { %v50_v5 = vmul.f32 %v84_v3, %v42_v1 }
  0x81   :  { %v51_v8 = vadd.f32 %v50_v5, %v47_v4 }
  0x86   :  { %v44_v7 = vpop.permute.xlu0 %43 }
  0x87   :  { %v54_v10 = vmul.f32 %v85_v6, %v44_v7 }
  0x89   :  { %v55_v11 = vadd.f32 %v54_v10, %v51_v8 }
  0x8b   :  { %v58_v12 = vadd.f32 %v86_v9, %v55_v11 }
  0x8d   :  { %59 = vst [vmem:[#allocation7] sm:$0xff] %v58_v12 }
  0x8e   :  { %70 = dma.vmem_to_hbm [thread:$0]  %s66_s20, 128, %s68_s23, [#allocation4]  }
  0x8f   :  { %163 = dma.done.wait [#allocation4], 128  }
  0x90   :  { %164 = vsyncadd [#allocation4], 4294967168 }
  0x91   :  { %75 = vsyncpa [#allocation3], 1 }
  0x92   :  { %76 = vsyncpa [#allocation6], 1 }
  0x93   :  { %77 = vsyncpa [#allocation4], 1 }

</bundles_post_ra>
